<compile_context>
chip_gen: v6e
topology: v6e:2x2x1
jax: 0.10.0
libtpu: 0.0.40
codegen_flags: <defaults>
</compile_context>

<pallas_src>
import jax
import jax.numpy as jnp
from jax.experimental import pallas as pl
from jax.experimental.pallas import tpu as pltpu

LN_EPS = 1e-5        # eps used by nn.LayerNorm (default) AND forward_layer_norm_diag

_TEMP_F32_BYTES = 16                  # ~4 live full-tile f32 temporaries in the kernel
_PARAM_HEADROOM = 4 * 1024 * 1024     # params + Mosaic internal scratch headroom
_MAX_ROW_BLOCK = 8192


def _round_up(x, m):
    return ((x + m - 1) // m) * m


def _vmem_limit_bytes():
    cap = 64 * 1024 * 1024            # conservative default: v7x per-TensorCore VMEM
    try:
        cap = int(pltpu.get_tpu_info().vmem_capacity_bytes)
    except Exception:
        pass
    # ~75% of physical VMEM, never above 100 MiB: ~48 MiB on v7x, ~96 MiB on v5e/v6e.
    return min((cap * 3) // 4, 100 * 1024 * 1024)


def _choose_row_block(R, D, itemsize, vmem_limit):
    # Per-row VMEM cost: 4 row-blocked streams (2 in + 2 out) x 2 pipeline buffers
    # x itemsize, plus in-kernel f32 temporaries (xm cast, centered, scale, xv cast).
    per_row_bytes = D * (8 * itemsize + _TEMP_F32_BYTES)
    data_budget = max(vmem_limit - _PARAM_HEADROOM, per_row_bytes)
    # Sublane alignment: 8 rows for 32-bit, 16 for bf16, 32 for 8-bit dtypes.
    align = max(8, 32 // max(1, itemsize))
    rb = max(align, (data_budget // per_row_bytes) // align * align)
    rb = min(rb, _MAX_ROW_BLOCK)
    rb = min(rb, _round_up(R, align))          # never larger than the (aligned) row count
    # Megacore balance (v7x): aim for an even number of grid steps >= 2.
    if R > align:
        nblocks = pl.cdiv(R, rb)
        if nblocks < 2:
            nblocks = 2
        if nblocks % 2:
            nblocks += 1
        rb = min(rb, _round_up(pl.cdiv(R, nblocks), align))
    return rb


def _suq_layernorm_kernel(xm_ref, xv_ref, params_ref, om_ref, ov_ref):
    # Row-blocked inputs; stats in f32 regardless of input dtype.
    xm = xm_ref[...].astype(jnp.float32)          # (rows, D)
    params = params_ref[...]                      # (3, D) f32: gamma / gamma^2 / beta
    gamma = params[0:1, :]
    gamma_sq = params[1:2, :]
    beta = params[2:3, :]

    mean = jnp.mean(xm, axis=-1, keepdims=True)                   # (rows, 1)
    centered = xm - mean
    var = jnp.mean(centered * centered, axis=-1, keepdims=True)   # biased variance

    inv_std = jax.lax.rsqrt(var + LN_EPS)                         # EUP, reused below
    om_ref[...] = (centered * inv_std * gamma + beta).astype(om_ref.dtype)

    # 1/(var + eps) == inv_std^2 since the LayerNorm eps equals the diag eps.
    inv_var = inv_std * inv_std
    scale = inv_var * gamma_sq                                    # (rows, D) f32
    ov_ref[...] = (scale * xv_ref[...].astype(jnp.float32)).astype(ov_ref.dtype)


def suq_layernorm_diag(x_mean, x_var, ln_weight, ln_bias, *, row_block=None):
    """Returns (out_mean, out_var), both shaped [B, T, D] like the inputs."""
    B, T, D = x_mean.shape
    R = B * T
    itemsize = max(jnp.dtype(x_mean.dtype).itemsize, jnp.dtype(x_var.dtype).itemsize)

    vmem_limit = _vmem_limit_bytes()
    if row_block is None:
        row_block = _choose_row_block(R, D, itemsize, vmem_limit)
    else:
        align = max(8, 32 // max(1, itemsize))
        row_block = max(align, _round_up(row_block, align))

    # No row padding: the grid uses cdiv and Pallas masks the partial last block.
    # Rows are independent, so garbage rows in the last block never contaminate
    # valid outputs and are never written back.
    grid = (pl.cdiv(R, row_block),)

    xm2 = x_mean.reshape(R, D)
    xv2 = x_var.reshape(R, D)

    # Single fused parameter stream: [gamma; gamma^2; beta] as one (3, D) f32 array.
    w = ln_weight.astype(jnp.float32).reshape(1, D)
    b = ln_bias.astype(jnp.float32).reshape(1, D)
    params = jnp.concatenate([w, w * w, b], axis=0)

    # TODO(synk): if D is not a multiple of 128, stores fall back to masked vst;
    # lane-padding D would require masking the D-reduction inside the kernel.
    row_spec = pl.BlockSpec((row_block, D), lambda i: (i, 0))
    param_spec = pl.BlockSpec((3, D), lambda i: (0, 0))

    out_shape = (
        jax.ShapeDtypeStruct((R, D), x_mean.dtype),
        jax.ShapeDtypeStruct((R, D), x_var.dtype),
    )

    out_mean2, out_var2 = pl.pallas_call(
        _suq_layernorm_kernel,
        out_shape=out_shape,
        grid_spec=pltpu.PrefetchScalarGridSpec(
            num_scalar_prefetch=0,
            grid=grid,
            in_specs=[row_spec, row_spec, param_spec],
            out_specs=[row_spec, row_spec],
        ),
        compiler_params=pltpu.CompilerParams(
            dimension_semantics=("parallel",),      # megacore sharding on v7x
            vmem_limit_bytes=vmem_limit,
        ),
    )(xm2, xv2, params)

    return out_mean2.reshape(B, T, D), out_var2.reshape(B, T, D)


def _reference(x_mean, x_var, ln_weight, ln_bias):
    xm = x_mean.astype(jnp.float32)
    mean = jnp.mean(xm, axis=-1, keepdims=True)
    var = jnp.mean((xm - mean) ** 2, axis=-1, keepdims=True)
    out_mean = (xm - mean) / jnp.sqrt(var + LN_EPS) * ln_weight + ln_bias
    scale = 1.0 / (var + LN_EPS) * ln_weight ** 2
    out_var = scale * x_var.astype(jnp.float32)
    return out_mean, out_var


if __name__ == "__main__":
    key = jax.random.PRNGKey(0)
    k1, k2 = jax.random.split(key)

    # Small but lane-dense test shape (D multiple of 128 -> unmasked stores).
    B, T, D = 2, 8, 128
    x_mean = jax.random.normal(k1, (B, T, D), dtype=jnp.float32)
    x_var = jnp.abs(jax.random.normal(k2, (B, T, D), dtype=jnp.float32)) + 0.1

    # Deterministic LayerNorm params (nn.LayerNorm(D): weight & bias of shape [D]).
    ln_weight = 1.0 + 0.01 * jnp.arange(D, dtype=jnp.float32)
    ln_bias = 0.05 * jnp.arange(D, dtype=jnp.float32) - 0.5

    out_mean, out_var = suq_layernorm_diag(x_mean, x_var, ln_weight, ln_bias)
    jax.block_until_ready((out_mean, out_var))

    ref_mean, ref_var = _reference(x_mean, x_var, ln_weight, ln_bias)
    assert out_mean.shape == (B, T, D) and out_var.shape == (B, T, D)
    assert jnp.allclose(out_mean, ref_mean, atol=1e-5, rtol=1e-5)
    assert jnp.allclose(out_var, ref_var, atol=1e-4, rtol=1e-4)

    # Ragged row count (B*T not a multiple of the row block / sublane alignment)
    # -> exercises Pallas partial-block masking (no wrapper padding).
    B2, T2 = 3, 5
    xm_r = jax.random.normal(k1, (B2, T2, D), dtype=jnp.float32)
    xv_r = jnp.abs(jax.random.normal(k2, (B2, T2, D), dtype=jnp.float32)) + 0.1
    om_r, ov_r = suq_layernorm_diag(xm_r, xv_r, ln_weight, ln_bias)
    jax.block_until_ready((om_r, ov_r))
    rm_r, rv_r = _reference(xm_r, xv_r, ln_weight, ln_bias)
    assert jnp.allclose(om_r, rm_r, atol=1e-5, rtol=1e-5)
    assert jnp.allclose(ov_r, rv_r, atol=1e-4, rtol=1e-4)

    # bf16 I/O smoke test (stats still computed in f32 inside the kernel).
    om_bf, ov_bf = suq_layernorm_diag(
        x_mean.astype(jnp.bfloat16), x_var.astype(jnp.bfloat16), ln_weight, ln_bias
    )
    jax.block_until_ready((om_bf, ov_bf))
    assert om_bf.dtype == jnp.bfloat16 and ov_bf.dtype == jnp.bfloat16
    assert bool(jnp.all(jnp.isfinite(om_bf.astype(jnp.float32))))
    assert bool(jnp.all(jnp.isfinite(ov_bf.astype(jnp.float32))))

    print("KERNEL_OK")
</pallas_src>

<mosaic_0001>
module attributes {stable_mosaic.version = 11 : i64} {
  func.func @_suq_layernorm_kernel(%arg0: i32, %arg1: memref<8x128xf32, #tpu.memory_space<vmem>>, %arg2: memref<8x128xf32, #tpu.memory_space<vmem>>, %arg3: memref<3x128xf32, #tpu.memory_space<vmem>>, %arg4: memref<8x128xf32, #tpu.memory_space<vmem>>, %arg5: memref<8x128xf32, #tpu.memory_space<vmem>>) attributes {dimension_semantics = [#tpu.dimension_semantics<parallel>], iteration_bounds = array<i64: 2>, scalar_prefetch = 0 : i64, scratch_operands = 0 : i64, tpu.core_type = #tpu.core_type<tc>, window_params = [{transform_indices = @transform_0, window_bounds = array<i64: 8, 128>}, {transform_indices = @transform_1, window_bounds = array<i64: 8, 128>}, {pipeline_mode = #tpu.pipeline_mode<synchronous>, transform_indices = @transform_2, window_bounds = array<i64: 3, 128>}, {transform_indices = @transform_3, window_bounds = array<i64: 8, 128>}, {transform_indices = @transform_4, window_bounds = array<i64: 8, 128>}]} {
    %c0 = arith.constant 0 : index
    %c0_0 = arith.constant 0 : index
    %0 = vector.load %arg1[%c0, %c0_0] : memref<8x128xf32, #tpu.memory_space<vmem>>, vector<8x128xf32>
    %c0_1 = arith.constant 0 : index
    %c0_2 = arith.constant 0 : index
    %1 = vector.load %arg3[%c0_1, %c0_2] : memref<3x128xf32, #tpu.memory_space<vmem>>, vector<3x128xf32>
    %2 = vector.extract_strided_slice %1 {offsets = [0, 0], sizes = [1, 128], strides = [1, 1]} : vector<3x128xf32> to vector<1x128xf32>
    %3 = vector.extract_strided_slice %1 {offsets = [1, 0], sizes = [1, 128], strides = [1, 1]} : vector<3x128xf32> to vector<1x128xf32>
    %4 = vector.extract_strided_slice %1 {offsets = [2, 0], sizes = [1, 128], strides = [1, 1]} : vector<3x128xf32> to vector<1x128xf32>
    %cst = arith.constant dense<0.000000e+00> : vector<8xf32>
    %5 = vector.multi_reduction <add>, %0, %cst [1] : vector<8x128xf32> to vector<8xf32>
    %6 = vector.shape_cast %5 : vector<8xf32> to vector<8x1xf32>
    %cst_3 = arith.constant 1.280000e+02 : f32
    %7 = vector.broadcast %cst_3 : f32 to vector<8x1xf32>
    %8 = arith.divf %6, %7 : vector<8x1xf32>
    %9 = vector.broadcast %8 : vector<8x1xf32> to vector<8x128xf32>
    %10 = arith.subf %0, %9 : vector<8x128xf32>
    %11 = arith.mulf %10, %10 : vector<8x128xf32>
    %cst_4 = arith.constant dense<0.000000e+00> : vector<8xf32>
    %12 = vector.multi_reduction <add>, %11, %cst_4 [1] : vector<8x128xf32> to vector<8xf32>
    %13 = vector.shape_cast %12 : vector<8xf32> to vector<8x1xf32>
    %cst_5 = arith.constant 1.280000e+02 : f32
    %14 = vector.broadcast %cst_5 : f32 to vector<8x1xf32>
    %15 = arith.divf %13, %14 : vector<8x1xf32>
    %cst_6 = arith.constant 9.99999974E-6 : f32
    %16 = vector.broadcast %cst_6 : f32 to vector<8x1xf32>
    %17 = arith.addf %15, %16 : vector<8x1xf32>
    %18 = math.rsqrt %17 : vector<8x1xf32>
    %19 = vector.broadcast %18 : vector<8x1xf32> to vector<8x128xf32>
    %20 = arith.mulf %10, %19 : vector<8x128xf32>
    %21 = vector.broadcast %2 : vector<1x128xf32> to vector<8x128xf32>
    %22 = arith.mulf %20, %21 : vector<8x128xf32>
    %23 = vector.broadcast %4 : vector<1x128xf32> to vector<8x128xf32>
    %24 = arith.addf %22, %23 : vector<8x128xf32>
    %c0_7 = arith.constant 0 : index
    %c0_8 = arith.constant 0 : index
    %25 = vector.load %arg4[%c0_7, %c0_8] : memref<8x128xf32, #tpu.memory_space<vmem>>, vector<8x128xf32>
    tpu.vector_store %arg4[%c0_7, %c0_8], %24 {strides = array<i32>} : memref<8x128xf32, #tpu.memory_space<vmem>>, vector<8x128xf32>,
    %26 = arith.mulf %18, %18 : vector<8x1xf32>
    %27 = vector.broadcast %26 : vector<8x1xf32> to vector<8x128xf32>
    %28 = vector.broadcast %3 : vector<1x128xf32> to vector<8x128xf32>
    %29 = arith.mulf %27, %28 : vector<8x128xf32>
    %c0_9 = arith.constant 0 : index
    %c0_10 = arith.constant 0 : index
    %30 = vector.load %arg2[%c0_9, %c0_10] : memref<8x128xf32, #tpu.memory_space<vmem>>, vector<8x128xf32>
    %31 = arith.mulf %29, %30 : vector<8x128xf32>
    %c0_11 = arith.constant 0 : index
    %c0_12 = arith.constant 0 : index
    %32 = vector.load %arg5[%c0_11, %c0_12] : memref<8x128xf32, #tpu.memory_space<vmem>>, vector<8x128xf32>
    tpu.vector_store %arg5[%c0_11, %c0_12], %31 {strides = array<i32>} : memref<8x128xf32, #tpu.memory_space<vmem>>, vector<8x128xf32>,
    return
  }
  func.func @transform_0(%arg0: i32) -> (i32, i32) {
    %c0_i32 = arith.constant 0 : i32
    %c0_i32_0 = arith.constant 0 : i32
    return %arg0, %c0_i32 : i32, i32
  }
  func.func @transform_1(%arg0: i32) -> (i32, i32) {
    %c0_i32 = arith.constant 0 : i32
    %c0_i32_0 = arith.constant 0 : i32
    return %arg0, %c0_i32 : i32, i32
  }
  func.func @transform_2(%arg0: i32) -> (i32, i32) {
    %c0_i32 = arith.constant 0 : i32
    %c0_i32_0 = arith.constant 0 : i32
    %c0_i32_1 = arith.constant 0 : i32
    return %c0_i32, %c0_i32_0 : i32, i32
  }
  func.func @transform_3(%arg0: i32) -> (i32, i32) {
    %c0_i32 = arith.constant 0 : i32
    %c0_i32_0 = arith.constant 0 : i32
    return %arg0, %c0_i32 : i32, i32
  }
  func.func @transform_4(%arg0: i32) -> (i32, i32) {
    %c0_i32 = arith.constant 0 : i32
    %c0_i32_0 = arith.constant 0 : i32
    return %arg0, %c0_i32 : i32, i32
  }
}

</mosaic_0001>

<bundles_post_ra>
// kernel: tpu_custom_call.1
= control target key start
LH: loop header
LB: loop body
LE: loop exit
PB: predicated region body
PF: predicated region fallthrough
CT: control target
= control target key end

     0   :  { %s1031_s0 = inlined_call_operand.hbm [shape: f32[16,128], index: 0, kind: input, shape index: {}]   ;;  %s1032_s1 = inlined_call_operand.hbm [shape: f32[16,128], index: 1, kind: input, shape index: {}]   ;;  %s1033_s2 = inlined_call_operand.hbm [shape: f32[3,128], index: 2, kind: input, shape index: {}]   ;;  %s1034_s3 = inlined_call_operand.hbm [shape: f32[16,128], index: 3, kind: output, shape index: {0}]   ;;  %s1035_s4 = inlined_call_operand.hbm [shape: f32[16,128], index: 4, kind: output, shape index: {1}]  }
   0x1   :  { %1040 = sst [smem:[#allocation16_spill]] %s1033_s2 }
   0x2   :  { %10 = vsyncpa [#allocation3], 0 }
   0x3   :  { %12 = vsyncpa [#allocation3 + $0x1], 0 }
   0x4   :  { %13 = vsyncpa [#allocation6], 0 }
   0x5   :  { %15 = vsyncpa [#allocation6 + $0x1], 0 }
   0x6   :  { %16 = vsyncpa [#allocation4], 0 }
   0x7   :  { %18 = vsyncpa [#allocation4 + $0x1], 0 }
   0x8   :  { %19 = vsyncpa [#allocation10], 0 }
   0x9   :  { %21 = vsyncpa [#allocation10 + $0x1], 0  ;;  %s778_s15 = smov 0   ;;  %s780_s16 = smov 0  }
   0xa   :  { %s782_s17 = smov 0   ;;  %s784_s18 = smov 0  }
   0xb LB: > { %s799_s19 = sadd.s32 4294967295, %s746_s18   ;;  %s473_s20 = sadd.s32 4294967294, %s746_s18   ;;  %s746_s18 = sphi %s784_s18, %s1060_s18   ;;  %s742_s17 = sphi %s782_s17, %s1059_s17   ;;  %s738_s16 = sphi %s780_s16, %s1058_s16   ;;  %s734_s15 = sphi %s778_s15, %s1057_s15  }
   0xc   : > { %p47_p0 = scmp.ne.s32.totalorder %s738_s16, %s734_s15  ;;  %p1036_p1 = scmp.eq.s32.totalorder %s799_s19, 0 }
   0xd   : > { %p124_p3 = scmp.eq.s32.totalorder %s473_s20, 1  ;;  %p474_p5 = scmp.ge.s32.totalorder %s746_s18, 1 }
   0xe   : > { %p808_p4 = por %p1036_p1, %p47_p0  ;;  %p157_p7 = scmp.lt.s32.totalorder %s746_s18, 3 }
   0xf   : > { %p813_p6 = por %p124_p3, %p47_p0  ;;  %s748_s24 = smov [#allocation7]  }
  0x10   : > { %s1041_s21 = scalar_select %p808_p4, 1, 0 }
  0x11   : > { %s1042_s22 = scalar_select %p813_p6, 1, 0 }
  0x12   : > { %p818_p8 = pnand %p474_p5, %p157_p7  ;;  %s170_s25 = sshll.u32 %s748_s24, 4  ;;  %s171_s25 = int_to_ptr.vmem [resolvable:$true] %s170_s25 }
  0x13   : > { %s826_s26 = sadd.s32 1, %s746_s18   ;;  %s34_s30 = sadd.s32 1, %s742_s17 }
  0x14   : > { %s1043_s23 = scalar_select %p818_p8, 1, 0 }
  0x15   : > { %p505_p10 = pneg %p818_p8  ;;  %s31_s28 = ssub.s32 %s746_s18, %s826_s26 }
  0x16   : > { %p836_p12 = scmp.eq.s32.totalorder %s31_s28, 0  ;;  %p41_p13 = scmp.ne.s32.totalorder %s742_s17, %s738_s16 }
  0x17   : > { %p830_p11 = pnand %p505_p10, %p1036_p1  ;;  %s573_s5 = scalar_lea.vmem %s171_s25, 64 }
  0x18   : > { %p574_p3 = scmp.ne.s32.totalorder %s171_s25, %s573_s5  ;;  %p581_p9 = scmp.lt.s32.totalorder %s171_s25, %s171_s25 }
  0x19   : > { %p564_p0 = pneg %p830_p11  ;;  %p582_p2 = scmp.lt.s32.totalorder %s573_s5, %s573_s5 }
  0x1b   : > { %p576_p5 = pnand %p574_p3, %p564_p0  ;;  %p583_p10 = por %p582_p2, %p581_p9 }
  0x1d   : > { %p577_p7 = pneg %p576_p5 }
  0x1f   : > { %p584_p1 = pnand %p583_p10, %p577_p7 }
  0x21   : > { %587 = shalt.err (!%p584_p1)
}
  0x22   : > { %s1046_s2 = sld [smem:[#allocation16_spill]]  ;;  %p42_p1 = scmp.eq.s32.totalorder %s746_s18, 0 }
  0x23   : > { %s853_s8 = scalar_select %p836_p12, %s742_s17, %s34_s30  }
  0x24   : > { %p1047_p2 = scmp.eq.s32.totalorder %s799_s19, 1  ;;  %p524_p0 = scmp.lt.s32.totalorder %s746_s18, 2 }
  0x25   : > { %s181_s10 = sand.u32 1, %s742_s17   ;;  %p43_p3 = por %p42_p1, %p41_p13 }
  0x26   : > { %p861_p9 = por %p1047_p2, %p41_p13  ;;  %s870_s11 = sshll.u32 %s181_s10, 3 }
  0x27   : > { %s478_s12 = sshll.u32 %s746_s18, 7  ;;  %s185_s24 = scalar_lea.vmem [#allocation2], %s870_s11 }
  0x28   : > { %508 = dma.hbm_to_vmem [thread:$0]  (!%p830_p11), %s1046_s2, 64, %s171_s25, [#allocation6]  }
  0x29   : > { %s1048_s9 = scalar_select %p861_p9, 1, 0 }
  0x2a   : > { %s876_s20 = scalar_lea.hbm %s1031_s0, %s478_s12  ;;  %s192_s25 = sshll.u32 %s185_s24, 4  ;;  %s193_s25 = int_to_ptr.vmem [resolvable:$true] %s192_s25 }
  0x2b   : > { %p879_p11 = pnand %p524_p0, %p43_p3  ;;  %s886_s30 = scalar_lea.hbm %s1032_s1, %s478_s12 }
  0x2c   : > { %s182_s5 = scalar_lea.sflag [#allocation3], %s181_s10  ;;  %s588_s6 = scalar_lea.hbm %s876_s20, 128 }
  0x2d   : > { %p589_p12 = scmp.ne.s32.totalorder %s876_s20, %s588_s6  ;;  %p590_p13 = pneg %p879_p11 }
  0x2e   : > { %s593_s14 = scalar_lea.hbm %s1031_s0, 256  ;;  %p594_p10 = scmp.lt.s32.totalorder %s876_s20, %s1031_s0 }
  0x2f   : > { %p591_p5 = pnand %p590_p13, %p589_p12  ;;  %p595_p1 = scmp.lt.s32.totalorder %s593_s14, %s588_s6 }
  0x31   : > { %p592_p7 = pneg %p591_p5  ;;  %p596_p2 = por %p595_p1, %p594_p10 }
  0x33   : > { %p597_p0 = pnand %p596_p2, %p592_p7 }
  0x35   : > { %600 = shalt.err (!%p597_p0)
}
  0x36   : > { %s601_s10 = scalar_lea.vmem %s193_s25, 128  ;;  %s749_s12 = smov [#allocation2]  }
  0x37   : > { %p602_p3 = scmp.ne.s32.totalorder %s193_s25, %s601_s10  ;;  %s606_s28 = sshll.u32 %s749_s12, 4  ;;  %s607_s28 = int_to_ptr.vmem [resolvable:$false] %s606_s28 }
  0x38   : > { %s608_s29 = scalar_lea.vmem %s607_s28, 256  ;;  %p609_p5 = scmp.lt.s32.totalorder %s193_s25, %s607_s28 }
  0x39   : > { %p604_p6 = pnand %p602_p3, %p590_p13  ;;  %p610_p9 = scmp.lt.s32.totalorder %s608_s29, %s601_s10 }
  0x3b   : > { %p605_p12 = pneg %p604_p6  ;;  %p611_p4 = por %p610_p9, %p609_p5 }
  0x3d   : > { %p612_p8 = pnand %p611_p4, %p605_p12 }
  0x3f   : > { %615 = shalt.err (!%p612_p8)
}
  0x40   : > { %512 = dma.hbm_to_vmem [thread:$0]  (!%p879_p11), %s876_s20, 128, %s193_s25, %s182_s5  }
  0x41   : > { %s199_s2 = sand.u32 1, %s746_s18   ;;  %s203_s6 = scalar_lea.vmem [#allocation5], %s870_s11 }
  0x42   : > { %s210_s7 = sshll.u32 %s203_s6, 4  ;;  %s200_s13 = scalar_lea.sflag [#allocation6], %s199_s2  ;;  %s211_s7 = int_to_ptr.vmem [resolvable:$true] %s210_s7 }
  0x43   : > { %s616_s14 = scalar_lea.hbm %s886_s30, 128  ;;  %s621_s12 = scalar_lea.hbm %s1032_s1, 256 }
  0x44   : > { %p617_p6 = scmp.ne.s32.totalorder %s886_s30, %s616_s14  ;;  %p622_p9 = scmp.lt.s32.totalorder %s886_s30, %s1032_s1 }
  0x45   : > { %p623_p7 = scmp.lt.s32.totalorder %s621_s12, %s616_s14 }
  0x46   : > { %p619_p4 = pnand %p617_p6, %p590_p13 }
  0x47   : > { %p624_p10 = por %p623_p7, %p622_p9 }
  0x48   : > { %p620_p8 = pneg %p619_p4 }
  0x4a   : > { %p625_p1 = pnand %p624_p10, %p620_p8 }
  0x4c   : > { %628 = shalt.err (!%p625_p1)
}
  0x4d   : > { %s629_s11 = scalar_lea.vmem %s211_s7, 128  ;;  %s750_s20 = smov [#allocation5]  }
  0x4e   : > { %p630_p2 = scmp.ne.s32.totalorder %s211_s7, %s629_s11  ;;  %s634_s25 = sshll.u32 %s750_s20, 4  ;;  %s635_s25 = int_to_ptr.vmem [resolvable:$false] %s634_s25 }
  0x4f   : > { %s636_s5 = scalar_lea.vmem %s635_s25, 256  ;;  %p637_p12 = scmp.lt.s32.totalorder %s211_s7, %s635_s25 }
  0x50   : > { %p632_p0 = pnand %p630_p2, %p590_p13  ;;  %p638_p5 = scmp.lt.s32.totalorder %s636_s5, %s629_s11 }
  0x52   : > { %p633_p3 = pneg %p632_p0  ;;  %p639_p6 = por %p638_p5, %p637_p12 }
  0x54   : > { %p640_p4 = pnand %p639_p6, %p633_p3 }
  0x56   : > { %643 = shalt.err (!%p640_p4)
}
  0x57   : > { %515 = dma.hbm_to_vmem [thread:$0]  (!%p879_p11), %s886_s30, 128, %s211_s7, %s200_s13  }
  0x58   : > { %p1050_p8 = scmp.ne.s32.totalorder %s1043_s23, 0 }
  0x59   : > { %s931_s2 = sand.u32 (!%p1050_p8), 1, %s738_s16   ;;  %p1051_p13 = scmp.ne.s32.totalorder (!%p1050_p8), %s1041_s21, 0 }
  0x5a   : > { %219 = sbr.rel (%p1050_p8) target bundleno = 444 (0x1bc), region = 32  ;;  %s934_s6 = sshll.u32 (!%p1050_p8), %s931_s2, 3 }
  0x5b   : > { %s222_s14 = scalar_lea.sflag (!%p1050_p8), [#allocation3], %s931_s2  ;;  %s225_s24 = scalar_lea.vmem (!%p1050_p8), [#allocation2], %s934_s6 }
  0x5f   : > { %713 = dma.done.wait (%p1051_p13), %s222_s14, 128  }
  0x60   : > { %715 = vsyncadd (%p1051_p13), %s222_s14, 4294967168  ;;  %s230_s23 = sand.u32 1, %s799_s19   ;;  %s234_s30 = scalar_lea.vmem [#allocation5], %s934_s6 }
  0x61   : > { %s231_s27 = scalar_lea.sflag [#allocation6], %s230_s23 }
  0x62   : > { %717 = dma.done.wait (%p1051_p13), %s231_s27, 128  }
  0x63   : > { %719 = vsyncadd (%p1051_p13), %s231_s27, 4294967168  ;;  %p1052_p11 = scmp.eq.s32.totalorder %s799_s19, 0 }
  0x65   : > { %721 = dma.done.wait (%p1052_p11), [#allocation6], 64   ;;  %p1053_p9 = pmov %p1052_p11 }
  0x66   : > { %v273_v0 = vld [vmem:[%s225_s24] sm:$0xff]  ;;  %v287_v8 = vlaneseq  ;;  %s489_s21 = sshll.u32 %s799_s19, 7  ;;  %s265_s7 = scalar_lea.vmem [#allocation8], %s934_s6  ;;  %v304_v20 = vld [vmem:[%s234_s30] sm:$0xff] }
  0x67   : > { %723 = vsyncadd (%p1053_p9), [#allocation6], 4294967232  ;;  %275 = vadd.xlane.f32.xlu0 %v273_v0  ;;  %v274_v12 = vld [vmem:[#allocation7] sm:$0x7]  ;;  %s326_s13 = sshll.u32 %s265_s7, 4  ;;  %s272_s10 = scalar_lea.vmem [#allocation9], %s934_s6  ;;  %s962_s13 = int_to_ptr.vmem [resolvable:$true] %s326_s13 }
  0x68   : > { %v288_v9 = vshrl.u32 %v287_v8, 7  ;;  %s339_s12 = sshll.u32 %s272_s10, 4  ;;  %s960_s11 = scalar_lea.hbm %s1034_s3, %s489_s21  ;;  %s969_s12 = int_to_ptr.vmem [resolvable:$true] %s339_s12 }
  0x69   : > { %s967_s25 = scalar_lea.hbm %s1035_s4, %s489_s21  ;;  %s308_s5 = scalar_lea.sflag [#allocation4], %s931_s2 }
  0x6a   : > { %v289_v10 = vsub.s32 0, %v288_v9  ;;  %v301_v11 = vsub.s32 1, %v288_v9  ;;  %v294_v13 = vsub.s32 2, %v288_v9  ;;  %s644_s6 = scalar_lea.vmem %s962_s13, 128  ;;  %p1054_p10 = scmp.ne.s32.totalorder %s1048_s9, 0 }
  0x6b   : > { %p645_p7 = scmp.ne.s32.totalorder %s962_s13, %s644_s6  ;;  %s751_s14 = smov [#allocation8]  }
  0x6c   : > { %v290_v14 = vrot.slane %v274_v12, %v289_v10  ;;  %v302_v15 = vrot.slane %v274_v12, %v301_v11  ;;  %v295_v18 = vrot.slane %v274_v12, %v294_v13  ;;  %s648_s24 = sshll.u32 %s751_s14, 4  ;;  %s649_s24 = int_to_ptr.vmem [resolvable:$false] %s648_s24 }
  0x6d   : > { %p646_p1 = pnand %p645_p7, %p1054_p10  ;;  %s650_s23 = scalar_lea.vmem %s649_s24, 256 }
  0x6e   : > { %p651_p0 = scmp.lt.s32.totalorder %s962_s13, %s649_s24  ;;  %p652_p3 = scmp.lt.s32.totalorder %s650_s23, %s644_s6 }
  0x6f   : > { %p647_p2 = pneg %p646_p1 }
  0x70   : > { %p653_p12 = por %p652_p3, %p651_p0 }
  0x72   : > { %p654_p5 = pnand %p653_p12, %p647_p2 }
  0xf0   : > { %v276_v1 = vpop.xlane.xlu0 %275 }
  0xf1   : > { %v278_v2 = vmul.f32 0.0078125, %v276_v1 }
  0xf3   : > { %v279_v3 = vsub.f32 %v273_v0, %v278_v2 }
  0xf5   : > { %v280_v4 = vmul.f32 %v279_v3, %v279_v3 }
  0xf7   : > { %281 = vadd.xlane.f32.xlu0 %v280_v4 }
 0x180   : > { %v282_v5 = vpop.xlane.xlu0 %281 }
 0x181   : > { %v283_v6 = vmul.f32 0.0078125, %v282_v5 }
 0x183   : > { %v284_v7 = vadd.f32 1e-05, %v283_v6 }
 0x185   : > { %560 = vrsqrt.f32 %v284_v7 }
 0x192   : > { %v561_v16 = vpop.eup %560 }
 0x193   : > { %v286_v17 = vmul.f32 %v561_v16, %v279_v3  ;;  %v298_v19 = vmul.f32 %v561_v16, %v561_v16 }
 0x195   : > { %v291_v21 = vmul.f32 %v290_v14, %v286_v17  ;;  %v303_v22 = vmul.f32 %v302_v15, %v298_v19 }
 0x197   : > { %v296_v23 = vadd.f32 %v295_v18, %v291_v21  ;;  %v305_v24 = vmul.f32 %v304_v20, %v303_v22 }
 0x199   : > { %297 = vst [vmem:[%s265_s7] sm:$0xff] %v296_v23  ;;  %306 = vst [vmem:[%s272_s10] sm:$0xff] %v305_v24 }
 0x19a   : > { %657 = shalt.err (!%p654_p5)
}
 0x19b   : > { %s658_s27 = scalar_lea.hbm %s960_s11, 128  ;;  %s662_s7 = scalar_lea.hbm %s1034_s3, 256 }
 0x19c   : > { %p659_p6 = scmp.ne.s32.totalorder %s960_s11, %s658_s27  ;;  %p663_p13 = scmp.lt.s32.totalorder %s960_s11, %s1034_s3 }
 0x19d   : > { %p664_p11 = scmp.lt.s32.totalorder %s662_s7, %s658_s27 }
 0x19e   : > { %p660_p4 = pnand %p659_p6, %p1054_p10 }
 0x19f   : > { %p665_p9 = por %p664_p11, %p663_p13 }
 0x1a0   : > { %p661_p8 = pneg %p660_p4 }
 0x1a2   : > { %p666_p7 = pnand %p665_p9, %p661_p8 }
 0x1a4   : > { %669 = shalt.err (!%p666_p7)
}
 0x1a5   : > { %501 = dma.vmem_to_hbm [thread:$0]  (%p1054_p10), %s962_s13, 128, %s960_s11, %s308_s5  }
 0x1a6   : > { %s313_s29 = scalar_lea.sflag [#allocation10], %s931_s2  ;;  %s670_s19 = scalar_lea.vmem %s969_s12, 128 }
 0x1a7   : > { %p671_p1 = scmp.ne.s32.totalorder %s969_s12, %s670_s19  ;;  %s752_s20 = smov [#allocation9]  }
 0x1a8   : > { %s674_s6 = sshll.u32 %s752_s20, 4  ;;  %s675_s6 = int_to_ptr.vmem [resolvable:$false] %s674_s6 }
 0x1a9   : > { %p672_p2 = pnand %p671_p1, %p1054_p10  ;;  %s676_s14 = scalar_lea.vmem %s675_s6, 256 }
 0x1aa   : > { %p677_p3 = scmp.lt.s32.totalorder %s969_s12, %s675_s6  ;;  %p678_p12 = scmp.lt.s32.totalorder %s676_s14, %s670_s19 }
 0x1ab   : > { %p673_p0 = pneg %p672_p2 }
 0x1ac   : > { %p679_p5 = por %p678_p12, %p677_p3 }
 0x1ae   : > { %p680_p6 = pnand %p679_p5, %p673_p0 }
 0x1b0   : > { %683 = shalt.err (!%p680_p6)
}
 0x1b1   : > { %s684_s13 = scalar_lea.hbm %s967_s25, 128  ;;  %s688_s5 = scalar_lea.hbm %s1035_s4, 256 }
 0x1b2   : > { %p685_p4 = scmp.ne.s32.totalorder %s967_s25, %s684_s13  ;;  %p689_p11 = scmp.lt.s32.totalorder %s967_s25, %s1035_s4 }
 0x1b3   : > { %p690_p9 = scmp.lt.s32.totalorder %s688_s5, %s684_s13 }
 0x1b4   : > { %p686_p8 = pnand %p685_p4, %p1054_p10 }
 0x1b5   : > { %p691_p7 = por %p690_p9, %p689_p11 }
 0x1b6   : > { %p687_p13 = pneg %p686_p8 }
 0x1b8   : > { %p692_p1 = pnand %p691_p7, %p687_p13 }
 0x1ba   : > { %695 = shalt.err (!%p692_p1)
}
 0x1bb   : > { %502 = dma.vmem_to_hbm [thread:$0]  (%p1054_p10), %s969_s12, 128, %s967_s25, %s313_s29  }
 0x1bc PF: > { %s351_s27 = sand.u32 1, %s734_s15   ;;  %p1055_p2 = scmp.ne.s32.totalorder %s1042_s22, 0 }
 0x1bd   : > { %p1056_p0 = scmp.ge.s32.totalorder %s746_s18, 2  ;;  %s352_s30 = scalar_lea.sflag [#allocation4], %s351_s27 }
 0x1bf   : > { %p517_p3 = pnand %p1056_p0, %p1055_p2 }
 0x1c1   : > { %p518_p12 = pneg %p517_p3 }
 0x1c3   : > { %725 = dma.done.wait (%p518_p12), %s352_s30, 128  }
 0x1c4   : > { %727 = vsyncadd (%p518_p12), %s352_s30, 4294967168  ;;  %s361_s21 = scalar_lea.sflag [#allocation10], %s351_s27 }
 0x1c5   : > { %729 = dma.done.wait (%p518_p12), %s361_s21, 128  }
 0x1c6   : > { %731 = vsyncadd (%p518_p12), %s361_s21, 4294967168  ;;  %p24_p10 = scmp.ge.s32.totalorder %s826_s26, 4   ;;  %s1057_s15 = smov %s738_s16 }
 0x1c7   : > { %s1058_s16 = smov %s742_s17  ;;  %s1059_s17 = smov %s853_s8 }
 0x1c8   : > { %s1060_s18 = smov %s826_s26  ;;  %26 = sbr.rel (!%p24_p10) target bundleno = 11 (0xb), region = 111 }
 0x1cd   :  { %366 = vsyncpa [#allocation3], 1 }
 0x1ce   :  { %368 = vsyncpa [#allocation3 + $0x1], 1 }
 0x1cf   :  { %369 = vsyncpa [#allocation6], 1 }
 0x1d0   :  { %371 = vsyncpa [#allocation6 + $0x1], 1 }
 0x1d1   :  { %372 = vsyncpa [#allocation4], 1 }
 0x1d2   :  { %374 = vsyncpa [#allocation4 + $0x1], 1 }
 0x1d3   :  { %375 = vsyncpa [#allocation10], 1 }
 0x1d4   :  { %377 = vsyncpa [#allocation10 + $0x1], 1 }

</bundles_post_ra>
